<compile_context>
chip_gen: v7x
topology: tpu7x:2x2x1
jax: 0.10.0
libtpu: 0.0.40
codegen_flags: <defaults>
</compile_context>

<pallas_src>
import math

import jax
import jax.numpy as jnp
from jax.experimental import pallas as pl
from jax.experimental.pallas import tpu as pltpu

# Logical (PyTorch) dims and lane-aligned padded dims.
IN_F, H1, H2 = 784, 300, 100
H1_PAD, H2_PAD, OUT_PAD = 384, 128, 128

TILE_B_MAX = 2048  # max batch rows per grid step (fits ~21 MiB VMEM at f32 x)


def _round_up(n, m):
    return ((n + m - 1) // m) * m


def _choose_tiling(B):
    """Pick (tile_b, b_pad) so that grid >= 2 steps, tile_b <= TILE_B_MAX,
    tile_b is a multiple of 8, and batch padding waste is minimal."""
    n_steps = max(2, -(-B // TILE_B_MAX))          # ceil, at least 2 steps
    tile_b = _round_up(max(1, -(-B // n_steps)), 8)
    tile_b = max(8, min(tile_b, TILE_B_MAX))
    b_pad = _round_up(B, tile_b)
    if b_pad // tile_b < 2:                        # guarantee >= 2 grid steps
        b_pad = 2 * tile_b
    return tile_b, b_pad


def mlp_kernel(x_ref, w1_ref, b1_ref, w2_ref, b2_ref, w3_ref, b3_ref, o_ref):
    # x arrives as f32 (tile_b, 784); cast to bf16 in-kernel (MXU dtype),
    # accumulate in f32, bias + ReLU in f32.
    x = x_ref[...].astype(jnp.bfloat16)                                # (tb, 784)
    h1 = jnp.dot(x, w1_ref[...], preferred_element_type=jnp.float32) + b1_ref[...]
    h1 = jnp.maximum(h1, 0.0).astype(jnp.bfloat16)                     # (tb, 384)
    h2 = jnp.dot(h1, w2_ref[...], preferred_element_type=jnp.float32) + b2_ref[...]
    h2 = jnp.maximum(h2, 0.0).astype(jnp.bfloat16)                     # (tb, 128)
    out = jnp.dot(h2, w3_ref[...], preferred_element_type=jnp.float32) + b3_ref[...]
    o_ref[...] = out.astype(o_ref.dtype)                               # (tb, 128) bf16


def prepare_padded_params(params):
    """Pad f32 (in,out) weights / (1,out) biases to lane-aligned output dims.

    Weights -> bf16, biases stay f32. Call ONCE at init; pass the result to
    letnet_300_100_forward (do not re-pad per call).
    """
    w1, b1, w2, b2, w3, b3 = params

    def pad_w(w, rows, cols):
        wp = jnp.zeros((rows, cols), dtype=jnp.float32)
        wp = wp.at[: w.shape[0], : w.shape[1]].set(w)
        return wp.astype(jnp.bfloat16)

    def pad_b(b, cols):
        bp = jnp.zeros((1, cols), dtype=jnp.float32)
        return bp.at[:, : b.shape[1]].set(b)

    return (
        pad_w(w1, IN_F, H1_PAD), pad_b(b1, H1_PAD),      # layer 1: K=784 unpadded
        pad_w(w2, H1_PAD, H2_PAD), pad_b(b2, H2_PAD),
        pad_w(w3, H2_PAD, OUT_PAD), pad_b(b3, OUT_PAD),
    )


def letnet_300_100_forward(x, padded_params, num_classes=10):
    """x: (B, 1, 28, 28) float32 (NCHW, like PyTorch). Returns (B, num_classes) f32."""
    w1p, b1p, w2p, b2p, w3p, b3p = padded_params

    B = x.shape[0]
    x_flat = x.reshape(B, -1).astype(jnp.float32)  # (B, 784); matches torch reshape

    tile_b, b_pad = _choose_tiling(B)
    if b_pad != B:
        x_flat = jnp.pad(x_flat, ((0, b_pad - B), (0, 0)))  # zero rows, sliced off below

    grid = (b_pad // tile_b,)

    flops = 2 * b_pad * (IN_F * H1_PAD + H1_PAD * H2_PAD + H2_PAD * OUT_PAD)
    bytes_accessed = (
        b_pad * IN_F * 4                                       # x streamed as f32
        + (w1p.size + w2p.size + w3p.size) * 2                 # bf16 weights
        + (b1p.size + b2p.size + b3p.size) * 4                 # f32 biases
        + b_pad * OUT_PAD * 2                                  # bf16 output
    )

    out_padded = pl.pallas_call(
        mlp_kernel,
        out_shape=jax.ShapeDtypeStruct((b_pad, OUT_PAD), jnp.bfloat16),
        grid=grid,
        in_specs=[
            pl.BlockSpec((tile_b, IN_F), lambda i: (i, 0)),    # x: tiled over batch, full 784
            pl.BlockSpec((IN_F, H1_PAD), lambda i: (0, 0)),    # weights/biases VMEM-resident
            pl.BlockSpec((1, H1_PAD), lambda i: (0, 0)),
            pl.BlockSpec((H1_PAD, H2_PAD), lambda i: (0, 0)),
            pl.BlockSpec((1, H2_PAD), lambda i: (0, 0)),
            pl.BlockSpec((H2_PAD, OUT_PAD), lambda i: (0, 0)),
            pl.BlockSpec((1, OUT_PAD), lambda i: (0, 0)),
        ],
        out_specs=pl.BlockSpec((tile_b, OUT_PAD), lambda i: (i, 0)),
        compiler_params=pltpu.CompilerParams(
            dimension_semantics=("parallel",),        # shards across 2 TCs on v7x
            vmem_limit_bytes=48 << 20,                # > v5e's 16 MiB default, < v7x's 64 MiB phys
        ),
        cost_estimate=pl.CostEstimate(
            flops=flops, transcendentals=0, bytes_accessed=bytes_accessed
        ),
    )(x_flat, w1p, b1p, w2p, b2p, w3p, b3p)

    return out_padded[:B, :num_classes].astype(jnp.float32)


def init_params(key, num_classes=10):
    """Xavier (Glorot) normal weights, zero biases — matches `initialize(model)`."""
    dims = [(IN_F, H1), (H1, H2), (H2, num_classes)]
    params = []
    keys = jax.random.split(key, len(dims))
    for k, (fan_in, fan_out) in zip(keys, dims):
        std = math.sqrt(2.0 / (fan_in + fan_out))
        w = jax.random.normal(k, (fan_in, fan_out), dtype=jnp.float32) * std
        b = jnp.zeros((1, fan_out), dtype=jnp.float32)
        params += [w, b]
    return tuple(params)


def reference_forward(x, params):
    w1, b1, w2, b2, w3, b3 = params
    x = x.reshape(x.shape[0], -1)
    h1 = jnp.maximum(x @ w1 + b1, 0.0)
    h2 = jnp.maximum(h1 @ w2 + b2, 0.0)
    return h2 @ w3 + b3


if __name__ == "__main__":
    key = jax.random.PRNGKey(0)
    k_x, k_p = jax.random.split(key)

    batch, num_classes = 8, 10
    x = jax.random.normal(k_x, (batch, 1, 28, 28), dtype=jnp.float32)  # NCHW
    params = init_params(k_p, num_classes=num_classes)

    # Pad/cast the weights ONCE (outside the per-call forward path).
    padded_params = prepare_padded_params(params)

    out = letnet_300_100_forward(x, padded_params, num_classes=num_classes)
    out = jax.block_until_ready(out)

    ref = reference_forward(x, params)  # f32 reference
    assert out.shape == (batch, num_classes), out.shape
    # bf16 matmul operands + bf16 logits (f32 MXU accumulate) => looser tolerance.
    assert jnp.allclose(out, ref, atol=5e-2, rtol=5e-2), "mismatch vs JAX reference"

    print("KERNEL_OK")
</pallas_src>

<mosaic_0001>
module attributes {stable_mosaic.version = 11 : i64} {
  func.func @mlp_kernel(%arg0: i32, %arg1: memref<8x784xf32, #tpu.memory_space<vmem>>, %arg2: memref<784x384xbf16, #tpu.memory_space<vmem>>, %arg3: memref<1x384xf32, #tpu.memory_space<vmem>>, %arg4: memref<384x128xbf16, #tpu.memory_space<vmem>>, %arg5: memref<1x128xf32, #tpu.memory_space<vmem>>, %arg6: memref<128x128xbf16, #tpu.memory_space<vmem>>, %arg7: memref<1x128xf32, #tpu.memory_space<vmem>>, %arg8: memref<8x128xbf16, #tpu.memory_space<vmem>>) attributes {dimension_semantics = [#tpu.dimension_semantics<parallel>], iteration_bounds = array<i64: 2>, scalar_prefetch = 0 : i64, scratch_operands = 0 : i64, tpu.core_type = #tpu.core_type<tc>, window_params = [{transform_indices = @transform_0, window_bounds = array<i64: 8, 784>}, {pipeline_mode = #tpu.pipeline_mode<synchronous>, transform_indices = @transform_1, window_bounds = array<i64: 784, 384>}, {pipeline_mode = #tpu.pipeline_mode<synchronous>, transform_indices = @transform_2, window_bounds = array<i64: 1, 384>}, {pipeline_mode = #tpu.pipeline_mode<synchronous>, transform_indices = @transform_3, window_bounds = array<i64: 384, 128>}, {pipeline_mode = #tpu.pipeline_mode<synchronous>, transform_indices = @transform_4, window_bounds = array<i64: 1, 128>}, {pipeline_mode = #tpu.pipeline_mode<synchronous>, transform_indices = @transform_5, window_bounds = array<i64: 128, 128>}, {pipeline_mode = #tpu.pipeline_mode<synchronous>, transform_indices = @transform_6, window_bounds = array<i64: 1, 128>}, {transform_indices = @transform_7, window_bounds = array<i64: 8, 128>}]} {
    %c0 = arith.constant 0 : index
    %c0_0 = arith.constant 0 : index
    %0 = vector.load %arg1[%c0, %c0_0] : memref<8x784xf32, #tpu.memory_space<vmem>>, vector<8x784xf32>
    %1 = arith.truncf %0 : vector<8x784xf32> to vector<8x784xbf16>
    %c0_1 = arith.constant 0 : index
    %c0_2 = arith.constant 0 : index
    %2 = vector.load %arg2[%c0_1, %c0_2] : memref<784x384xbf16, #tpu.memory_space<vmem>>, vector<784x384xbf16>
    %cst = arith.constant dense<0.000000e+00> : vector<8x384xf32>
    %3 = tpu.matmul %1, %2, %cst {dimension_numbers = #tpu.dot_dimension_numbers<[1], [0], [0], [1], [0, 0, 1, 1], [], []>} : vector<8x784xbf16>, vector<784x384xbf16>, vector<8x384xf32> -> vector<8x384xf32>
    %c0_3 = arith.constant 0 : index
    %c0_4 = arith.constant 0 : index
    %4 = vector.load %arg3[%c0_3, %c0_4] : memref<1x384xf32, #tpu.memory_space<vmem>>, vector<1x384xf32>
    %5 = vector.broadcast %4 : vector<1x384xf32> to vector<8x384xf32>
    %6 = arith.addf %3, %5 : vector<8x384xf32>
    %cst_5 = arith.constant 0.000000e+00 : f32
    %7 = vector.broadcast %cst_5 : f32 to vector<8x384xf32>
    %8 = arith.maximumf %6, %7 : vector<8x384xf32>
    %9 = arith.truncf %8 : vector<8x384xf32> to vector<8x384xbf16>
    %c0_6 = arith.constant 0 : index
    %c0_7 = arith.constant 0 : index
    %10 = vector.load %arg4[%c0_6, %c0_7] : memref<384x128xbf16, #tpu.memory_space<vmem>>, vector<384x128xbf16>
    %cst_8 = arith.constant dense<0.000000e+00> : vector<8x128xf32>
    %11 = tpu.matmul %9, %10, %cst_8 {dimension_numbers = #tpu.dot_dimension_numbers<[1], [0], [0], [1], [0, 0, 1, 1], [], []>} : vector<8x384xbf16>, vector<384x128xbf16>, vector<8x128xf32> -> vector<8x128xf32>
    %c0_9 = arith.constant 0 : index
    %c0_10 = arith.constant 0 : index
    %12 = vector.load %arg5[%c0_9, %c0_10] : memref<1x128xf32, #tpu.memory_space<vmem>>, vector<1x128xf32>
    %13 = vector.broadcast %12 : vector<1x128xf32> to vector<8x128xf32>
    %14 = arith.addf %11, %13 : vector<8x128xf32>
    %cst_11 = arith.constant 0.000000e+00 : f32
    %15 = vector.broadcast %cst_11 : f32 to vector<8x128xf32>
    %16 = arith.maximumf %14, %15 : vector<8x128xf32>
    %17 = arith.truncf %16 : vector<8x128xf32> to vector<8x128xbf16>
    %c0_12 = arith.constant 0 : index
    %c0_13 = arith.constant 0 : index
    %18 = vector.load %arg6[%c0_12, %c0_13] : memref<128x128xbf16, #tpu.memory_space<vmem>>, vector<128x128xbf16>
    %cst_14 = arith.constant dense<0.000000e+00> : vector<8x128xf32>
    %19 = tpu.matmul %17, %18, %cst_14 {dimension_numbers = #tpu.dot_dimension_numbers<[1], [0], [0], [1], [0, 0, 1, 1], [], []>} : vector<8x128xbf16>, vector<128x128xbf16>, vector<8x128xf32> -> vector<8x128xf32>
    %c0_15 = arith.constant 0 : index
    %c0_16 = arith.constant 0 : index
    %20 = vector.load %arg7[%c0_15, %c0_16] : memref<1x128xf32, #tpu.memory_space<vmem>>, vector<1x128xf32>
    %21 = vector.broadcast %20 : vector<1x128xf32> to vector<8x128xf32>
    %22 = arith.addf %19, %21 : vector<8x128xf32>
    %23 = arith.truncf %22 : vector<8x128xf32> to vector<8x128xbf16>
    %c0_17 = arith.constant 0 : index
    %c0_18 = arith.constant 0 : index
    %24 = vector.load %arg8[%c0_17, %c0_18] : memref<8x128xbf16, #tpu.memory_space<vmem>>, vector<8x128xbf16>
    tpu.vector_store %arg8[%c0_17, %c0_18], %23 {strides = array<i32>} : memref<8x128xbf16, #tpu.memory_space<vmem>>, vector<8x128xbf16>,
    return
  }
  func.func @transform_0(%arg0: i32) -> (i32, i32) {
    %c0_i32 = arith.constant 0 : i32
    %c0_i32_0 = arith.constant 0 : i32
    return %arg0, %c0_i32 : i32, i32
  }
  func.func @transform_1(%arg0: i32) -> (i32, i32) {
    %c0_i32 = arith.constant 0 : i32
    %c0_i32_0 = arith.constant 0 : i32
    %c0_i32_1 = arith.constant 0 : i32
    return %c0_i32, %c0_i32_0 : i32, i32
  }
  func.func @transform_2(%arg0: i32) -> (i32, i32) {
    %c0_i32 = arith.constant 0 : i32
    %c0_i32_0 = arith.constant 0 : i32
    %c0_i32_1 = arith.constant 0 : i32
    return %c0_i32, %c0_i32_0 : i32, i32
  }
  func.func @transform_3(%arg0: i32) -> (i32, i32) {
    %c0_i32 = arith.constant 0 : i32
    %c0_i32_0 = arith.constant 0 : i32
    %c0_i32_1 = arith.constant 0 : i32
    return %c0_i32, %c0_i32_0 : i32, i32
  }
  func.func @transform_4(%arg0: i32) -> (i32, i32) {
    %c0_i32 = arith.constant 0 : i32
    %c0_i32_0 = arith.constant 0 : i32
    %c0_i32_1 = arith.constant 0 : i32
    return %c0_i32, %c0_i32_0 : i32, i32
  }
  func.func @transform_5(%arg0: i32) -> (i32, i32) {
    %c0_i32 = arith.constant 0 : i32
    %c0_i32_0 = arith.constant 0 : i32
    %c0_i32_1 = arith.constant 0 : i32
    return %c0_i32, %c0_i32_0 : i32, i32
  }
  func.func @transform_6(%arg0: i32) -> (i32, i32) {
    %c0_i32 = arith.constant 0 : i32
    %c0_i32_0 = arith.constant 0 : i32
    %c0_i32_1 = arith.constant 0 : i32
    return %c0_i32, %c0_i32_0 : i32, i32
  }
  func.func @transform_7(%arg0: i32) -> (i32, i32) {
    %c0_i32 = arith.constant 0 : i32
    %c0_i32_0 = arith.constant 0 : i32
    return %arg0, %c0_i32 : i32, i32
  }
}

</mosaic_0001>

<bundles_post_ra>
// kernel: tpu_custom_call.1
= control target key start
LH: loop header
LB: loop body
LE: loop exit
PB: predicated region body
PF: predicated region fallthrough
CT: control target
= control target key end

     0   :  { %s3423_s0 = inlined_call_operand.hbm [shape: f32[16,784], index: 0, kind: input, shape index: {}]   ;;  %s3424_s1 = inlined_call_operand.hbm [shape: bf16[784,384], index: 1, kind: input, shape index: {}]   ;;  %s3425_s2 = inlined_call_operand.vmem [shape: f32[1,384], index: 2, kind: input, shape index: {}]   ;;  %s3426_s3 = inlined_call_operand.hbm [shape: bf16[384,128], index: 3, kind: input, shape index: {}]   ;;  %s3427_s4 = inlined_call_operand.vmem [shape: f32[1,128], index: 4, kind: input, shape index: {}]   ;;  %s3428_s5 = inlined_call_operand.hbm [shape: bf16[128,128], index: 5, kind: input, shape index: {}]   ;;  %s3429_s6 = inlined_call_operand.vmem [shape: f32[1,128], index: 6, kind: input, shape index: {}]   ;;  %s3430_s7 = inlined_call_operand.hbm [shape: bf16[16,128], index: 7, kind: output, shape index: {}]  }
   0x1   :  { %3435 = sst [smem:[#allocation16_spill]] %s3424_s1 }
   0x2   :  { %12 = vsyncpa [#allocation3], 0 }
   0x3   :  { %14 = vsyncpa [#allocation3 + $0x1], 0 }
   0x4   :  { %15 = vsyncpa [#allocation6], 0 }
   0x5   :  { %16 = vsyncpa [#allocation9], 0 }
   0x6   :  { %17 = vsyncpa [#allocation4], 0 }
   0x7   :  { %19 = vsyncpa [#allocation4 + $0x1], 0  ;;  %s3116_s24 = smov 0   ;;  %s3118_s25 = smov 0  }
   0x8   :  { %s3120_s26 = smov 0   ;;  %s3122_s27 = smov 0  }
   0x9 LB: > { %s3137_s28 = sadd.s32 4294967295, %s3062_s27   ;;  %s2192_s29 = sadd.s32 4294967294, %s3062_s27   ;;  %s3062_s27 = sphi %s3122_s27, %s3458_s27   ;;  %s3058_s26 = sphi %s3120_s26, %s3457_s26   ;;  %s3054_s25 = sphi %s3118_s25, %s3456_s25   ;;  %s3050_s24 = sphi %s3116_s24, %s3455_s24  }
   0xa   : > { %p45_p0 = scmp.ne.s32.totalorder %s3054_s25, %s3050_s24  ;;  %p3431_p1 = scmp.eq.s32.totalorder %s3137_s28, 0 }
   0xb   : > { %p201_p3 = scmp.eq.s32.totalorder %s2192_s29, 1  ;;  %p2193_p5 = scmp.ge.s32.totalorder %s3062_s27, 1 }
   0xc   : > { %p3146_p4 = por %p3431_p1, %p45_p0  ;;  %p208_p7 = scmp.lt.s32.totalorder %s3062_s27, 3 }
   0xd   : > { %p3151_p6 = por %p201_p3, %p45_p0  ;;  %s3064_s10 = smov [#allocation5]  }
   0xe   : > { %s3436_s30 = scalar_select %p3146_p4, 1, 0 }
   0xf   : > { %s3437_s8 = scalar_select %p3151_p6, 1, 0 }
  0x10   : > { %p3156_p8 = pnand %p2193_p5, %p208_p7  ;;  %s220_s11 = sshll.u32 %s3064_s10, 4  ;;  %s3160_s11 = int_to_ptr.vmem [resolvable:$true] %s220_s11 }
  0x11   : > { %3438 = sst [smem:[#allocation15_spill]] %s3437_s8  ;;  %s3065_s13 = smov [#allocation7]  }
  0x12   : > { %s3439_s9 = scalar_select %p3156_p8, 1, 0 }
  0x13   : > { %p2578_p9 = pneg %p3156_p8  ;;  %s236_s14 = sshll.u32 %s3065_s13, 4  ;;  %s3171_s14 = int_to_ptr.vmem [resolvable:$true] %s236_s14 }
  0x14   : > { %s3441_s1 = sld [smem:[#allocation16_spill]] }
  0x15   : > { %p3167_p11 = pnand %p2578_p9, %p3431_p1 }
  0x17   : > { %p3181_p13 = pneg %p3167_p11 }
  0x1a   : > { %s2874_s17 = scalar_lea.hbm %s3441_s1, 18816 }
  0x1b   : > { %p2875_p12 = scmp.ne.s32.totalorder %s3441_s1, %s2874_s17  ;;  %p2881_p5 = scmp.lt.u32.totalorder %s2874_s17, %s3441_s1 }
  0x1d   : > { %p2877_p0 = pnand %p3181_p13, %p2875_p12 }
  0x1f   : > { %p2878_p3 = pneg %p2877_p0 }
  0x21   : > { %p2883_p7 = pnand %p2881_p5, %p2878_p3 }
  0x23   : > { %2886 = shalt.err (!%p2883_p7)
}
  0x24   : > { %s2887_s23 = scalar_lea.vmem %s3160_s11, 18816  ;;  %p2895_p2 = scmp.lt.s32.totalorder %s3160_s11, %s3160_s11 }
  0x25   : > { %p2888_p9 = scmp.ne.s32.totalorder %s3160_s11, %s2887_s23  ;;  %p2896_p6 = scmp.lt.s32.totalorder %s2887_s23, %s2887_s23 }
  0x27   : > { %p2890_p10 = pnand %p2888_p9, %p3181_p13  ;;  %p2897_p12 = por %p2896_p6, %p2895_p2 }
  0x29   : > { %p2891_p1 = pneg %p2890_p10 }
  0x2b   : > { %p2898_p0 = pnand %p2897_p12, %p2891_p1 }
  0x2d   : > { %2901 = shalt.err (!%p2898_p0)
}
  0x2e   : > { %s3066_s29 = smov 192   ;;  %s3067_s10 = smov 12  }
  0x2f   : > { %2581 = dma.hbm_to_vmem [thread:$0]  (!%p3167_p11), %s3441_s1, 18816, %s3160_s11, [#allocation6], %s3066_s29, %s3066_s29, %s3067_s10  }
  0x30   : > { %s2902_s18 = scalar_lea.hbm %s3426_s3, 3072 }
  0x31   : > { %p2903_p2 = scmp.ne.s32.totalorder %s3426_s3, %s2902_s18  ;;  %p2909_p10 = scmp.lt.u32.totalorder %s2902_s18, %s3426_s3 }
  0x33   : > { %p2905_p1 = pnand %p2903_p2, %p3181_p13 }
  0x35   : > { %p2906_p6 = pneg %p2905_p1 }
  0x37   : > { %p2911_p3 = pnand %p2909_p10, %p2906_p6 }
  0x39   : > { %2914 = shalt.err (!%p2911_p3)
}
  0x3a   : > { %s2915_s11 = scalar_lea.vmem %s3171_s14, 3072  ;;  %p2923_p12 = scmp.lt.s32.totalorder %s3171_s14, %s3171_s14 }
  0x3b   : > { %p2916_p5 = scmp.ne.s32.totalorder %s3171_s14, %s2915_s11  ;;  %p2924_p0 = scmp.lt.s32.totalorder %s2915_s11, %s2915_s11 }
  0x3d   : > { %p2918_p7 = pnand %p2916_p5, %p3181_p13  ;;  %p2925_p2 = por %p2924_p0, %p2923_p12 }
  0x3f   : > { %p2919_p9 = pneg %p2918_p7 }
  0x41   : > { %p2926_p1 = pnand %p2925_p2, %p2919_p9 }
  0x43   : > { %2929 = shalt.err (!%p2926_p1)
}
  0x44   : > { %s3068_s29 = smov 64   ;;  %s3069_s10 = smov 4  }
  0x45   : > { %2584 = dma.hbm_to_vmem [thread:$0]  (!%p3167_p11), %s3426_s3, 3072, %s3171_s14, [#allocation6], %s3068_s29, %s3068_s29, %s3069_s10  }
  0x46   : > { %s3070_s16 = smov [#allocation8]   ;;  %s3226_s18 = sadd.s32 1, %s3062_s27  }
  0x47   : > { %s252_s17 = sshll.u32 %s3070_s16, 4  ;;  %s2930_s22 = scalar_lea.hbm %s3428_s5, 1024  ;;  %s253_s17 = int_to_ptr.vmem [resolvable:$true] %s252_s17 }
  0x48   : > { %p2931_p6 = scmp.ne.s32.totalorder %s3428_s5, %s2930_s22  ;;  %p2937_p5 = scmp.lt.u32.totalorder %s2930_s22, %s3428_s5 }
  0x4a   : > { %p2933_p10 = pnand %p2931_p6, %p3181_p13 }
  0x4c   : > { %p2934_p3 = pneg %p2933_p10 }
  0x4e   : > { %p2939_p7 = pnand %p2937_p5, %p2934_p3 }
  0x50   : > { %2942 = shalt.err (!%p2939_p7)
}
  0x51   : > { %s2943_s14 = scalar_lea.vmem %s253_s17, 1024  ;;  %p2951_p2 = scmp.lt.s32.totalorder %s253_s17, %s253_s17 }
  0x52   : > { %p2944_p9 = scmp.ne.s32.totalorder %s253_s17, %s2943_s14  ;;  %p2952_p1 = scmp.lt.s32.totalorder %s2943_s14, %s2943_s14 }
  0x54   : > { %p2946_p12 = pnand %p2944_p9, %p3181_p13  ;;  %p2953_p4 = por %p2952_p1, %p2951_p2 }
  0x56   : > { %p2947_p0 = pneg %p2946_p12 }
  0x58   : > { %p2954_p8 = pnand %p2953_p4, %p2947_p0 }
  0x5a   : > { %2957 = shalt.err (!%p2954_p8)
}
  0x5b   : > { %2587 = dma.hbm_to_vmem [thread:$0]  (!%p3167_p11), %s3428_s5, 1024, %s253_s17, [#allocation9], %s3068_s29, %s3068_s29, %s3069_s10  }
  0x5c   : > { %s29_s1 = ssub.s32 %s3062_s27, %s3226_s18  ;;  %s32_s8 = sadd.s32 1, %s3058_s26 }
  0x5d   : > { %p30_p4 = scmp.eq.s32.totalorder %s29_s1, 0  ;;  %p39_p8 = scmp.ne.s32.totalorder %s3058_s26, %s3054_s25 }
  0x5e   : > { %p40_p13 = scmp.eq.s32.totalorder %s3062_s27, 0  ;;  %p2599_p6 = scmp.lt.s32.totalorder %s3062_s27, 2 }
  0x5f   : > { %s3254_s12 = scalar_select %p30_p4, %s3058_s26, %s32_s8  }
  0x60   : > { %p41_p10 = por %p40_p13, %p39_p8  ;;  %p3443_p3 = scmp.eq.s32.totalorder %s3137_s28, 1 }
  0x61   : > { %s269_s16 = sand.u32 1, %s3058_s26   ;;  %s2560_s19 = smul.u32 896, %s3062_s27 }
  0x62   : > { %p3258_p5 = por %p3443_p3, %p39_p8  ;;  %s2559_s21 = smul.u32 56, %s269_s16 }
  0x63   : > { %p3264_p7 = pnand %p2599_p6, %p41_p10  ;;  %s3271_s17 = scalar_lea.hbm %s3423_s0, %s2560_s19 }
  0x64   : > { %s273_s23 = scalar_lea.vmem [#allocation2], %s2559_s21  ;;  %s270_s14 = scalar_lea.sflag [#allocation3], %s269_s16 }
  0x65   : > { %s281_s11 = sshll.u32 %s273_s23, 4  ;;  %s2958_s13 = scalar_lea.hbm %s3271_s17, 896  ;;  %s3273_s11 = int_to_ptr.vmem [resolvable:$true] %s281_s11 }
  0x66   : > { %p2959_p11 = scmp.ne.s32.totalorder %s3271_s17, %s2958_s13  ;;  %p2960_p9 = pneg %p3264_p7 }
  0x67   : > { %s2963_s8 = scalar_lea.hbm %s3423_s0, 1792  ;;  %p2964_p2 = scmp.lt.u32.totalorder %s3271_s17, %s3423_s0 }
  0x68   : > { %p2961_p12 = pnand %p2960_p9, %p2959_p11  ;;  %p2965_p1 = scmp.lt.u32.totalorder %s2963_s8, %s2958_s13 }
  0x69   : > { %p2967_p8 = scmp.lt.u32.totalorder %s2958_s13, %s3271_s17 }
  0x6a   : > { %p2962_p0 = pneg %p2961_p12  ;;  %p2966_p4 = por %p2965_p1, %p2964_p2 }
  0x6c   : > { %p2968_p13 = por %p2967_p8, %p2966_p4 }
  0x6e   : > { %p2969_p6 = pnand %p2968_p13, %p2962_p0 }
  0x70   : > { %2972 = shalt.err (!%p2969_p6)
}
  0x71   : > { %s2973_s16 = scalar_lea.vmem %s3273_s11, 896  ;;  %s3071_s21 = smov [#allocation2]  }
  0x72   : > { %p2974_p10 = scmp.ne.s32.totalorder %s3273_s11, %s2973_s16  ;;  %s2978_s10 = sshll.u32 %s3071_s21, 4  ;;  %s2979_s10 = int_to_ptr.vmem [resolvable:$false] %s2978_s10 }
  0x73   : > { %s2980_s23 = scalar_lea.vmem %s2979_s10, 1792  ;;  %p2981_p12 = scmp.lt.s32.totalorder %s3273_s11, %s2979_s10 }
  0x74   : > { %p2976_p3 = pnand %p2974_p10, %p2960_p9  ;;  %p2982_p2 = scmp.lt.s32.totalorder %s2980_s23, %s2973_s16 }
  0x76   : > { %p2977_p11 = pneg %p2976_p3  ;;  %p2983_p1 = por %p2982_p2, %p2981_p12 }
  0x78   : > { %p2984_p4 = pnand %p2983_p1, %p2977_p11 }
  0x7a   : > { %2987 = shalt.err (!%p2984_p4)
}
  0x7b   : > { %2591 = dma.hbm_to_vmem [thread:$0]  (!%p3264_p7), %s3271_s17, 896, %s3273_s11, %s270_s14  }
  0x7c   : > { %p3446_p0 = scmp.ne.s32.totalorder %s3439_s9, 0 }
  0x7d   : > { %s3303_s13 = sand.u32 (!%p3446_p0), 1, %s3054_s25   ;;  %p3447_p9 = scmp.ne.s32.totalorder (!%p3446_p0), %s3436_s30, 0 }
  0x7e   : > { %290 = sbr.rel (%p3446_p0) target bundleno = 1045 (0x415), region = 48  ;;  %s293_s1 = scalar_lea.sflag (!%p3446_p0), [#allocation3], %s3303_s13 }
  0x7f   : > { %s2561_s15 = smul.u32 (!%p3446_p0), 56, %s3303_s13 }
  0x81   : > { %s3307_s8 = scalar_lea.vmem (!%p3446_p0), [#allocation2], %s2561_s15 }
  0x85   : > { %3033 = dma.done.wait (%p3447_p9), %s293_s1, 896  }
  0x86   : > { %3035 = vsyncadd (%p3447_p9), %s293_s1, 4294966400  ;;  %p3448_p7 = scmp.eq.s32.totalorder %s3137_s28, 0 }
  0x88   : > { %3037 = dma.done.wait (%p3448_p7), [#allocation6], 21888   ;;  %p3449_p8 = pmov %p3448_p7 }
  0x89   : > { %p3450_p13 = pmov %p3448_p7 }
  0x8a   : > { %3039 = vsyncadd (%p3449_p8), [#allocation6], 4294945408 }
  0x8b   : > { %3041 = dma.done.wait (%p3450_p13), [#allocation9], 1024   ;;  %p3451_p6 = pmov %p3448_p7 }
  0x8c   : > { %v2646_v0 = vld [vmem:[#allocation5 + $0x4] ss:$12 sps:$4 sm:$0xff]   ;;  %v2648_v1 = vld [vmem:[#allocation5] ss:$12 sps:$4 sm:$0xff]   ;;  %v2649_v2 = vld [vmem:[#allocation5 + $0x1c] ss:$12 sps:$4 sm:$0xff]  }
  0x8d   : > { %3043 = vsyncadd (%p3451_p6), [#allocation9], 4294966272  ;;  %1355 = vmatprep.subr.bf16.mxu0 %v2646_v0  ;;  %v2651_v3 = vld [vmem:[#allocation5 + $0x18] ss:$12 sps:$4 sm:$0xff]   ;;  %v2652_v4 = vld [vmem:[#allocation5 + $0x34] ss:$12 sps:$4 sm:$0xff]  }
  0x8e   : > { %1356 = vmatpush1.bf16.msra.mxu0 %v2648_v1  ;;  %v2654_v5 = vld [vmem:[#allocation5 + $0x30] ss:$12 sps:$4 sm:$0xff]   ;;  %v2655_v6 = vld [vmem:[#allocation5 + $0x4c] ss:$12 sps:$4 sm:$0xff]   ;;  %v2657_v7 = vld [vmem:[#allocation5 + $0x48] ss:$12 sps:$4 sm:$0xff]  }
  0x8f   : > { %1357 = vmatprep.subr.bf16.mxu0 %v2649_v2  ;;  %v2658_v8 = vld [vmem:[#allocation5 + $0x64] ss:$12 sps:$4 sm:$0xff]   ;;  %v2660_v9 = vld [vmem:[#allocation5 + $0x60] ss:$12 sps:$4 sm:$0xff]   ;;  %v2661_v10 = vld [vmem:[#allocation5 + $0x7c] ss:$12 sps:$4 sm:$0xff]  }
  0x90   : > { %v2663_v11 = vld [vmem:[#allocation5 + $0x78] ss:$12 sps:$4 sm:$0xff]   ;;  %v2664_v12 = vld [vmem:[#allocation5 + $0x94] ss:$12 sps:$4 sm:$0xff]   ;;  %v2666_v15 = vld [vmem:[#allocation5 + $0x90] ss:$12 sps:$4 sm:$0xff]  }
  0x91   : > { %v341_v13 = vld [vmem:[%s3307_s8 + $0x8] sm:$0xff]  ;;  %v2705_v21 = vld [vmem:[#allocation5 + $0xe0] ss:$12 sps:$4 sm:$0xff]   ;;  %vm1351_vm0 = vcmask 130048   ;;  %vm3073_vm1 = vmmov 0   ;;  %s2203_s11 = sshll.u32 %s3303_s13, 2 }
  0x92   : > { %1358 = vmatpush1.bf16.msra.mxu0 %v2651_v3  ;;  %v348_v14 = vpack.c.bf16 %v341_v13, %v341_v13  ;;  %v2667_v16 = vld [vmem:[#allocation5 + $0xac] ss:$12 sps:$4 sm:$0xff]   ;;  %v2700_v17 = vld [vmem:[#allocation5 + $0xc8] ss:$12 sps:$4 sm:$0xff]   ;;  %v2670_v20 = vld [vmem:[#allocation5 + $0xc4] ss:$12 sps:$4 sm:$0xff]  }
  0x93   : > { %1359 = vmatprep.subr.bf16.mxu0 %v2652_v4  ;;  %v2701_v18 = vld [vmem:[#allocation5 + $0x8] ss:$12 sps:$4 sm:$0xff]   ;;  %2391 = vmatprep.subr.bf16.mxu1 %v2700_v17  ;;  %v2706_v22 = vld [vmem:[#allocation5 + $0x20] ss:$12 sps:$4 sm:$0xff]   ;;  %v2710_v25 = vld [vmem:[#allocation5 + $0xf8] ss:$12 sps:$4 sm:$0xff]  }
  0x94   : > { %1387 = vmatprep.mubr.bf16.mxu0 %v348_v14  ;;  %1551 = vmatprep.mubr.bf16.mxu1 %v348_v14  ;;  %v2669_v19 = vld [vmem:[#allocation5 + $0xa8] ss:$12 sps:$4 sm:$0xff]   ;;  %v2672_v23 = vld [vmem:[#allocation5 + $0xc0] ss:$12 sps:$4 sm:$0xff]   ;;  %v2711_v26 = vld [vmem:[#allocation5 + $0x38] ss:$12 sps:$4 sm:$0xff]  }
  0x95   : > { %2392 = vmatpush3.bf16.msra.mxu1 %v2701_v18  ;;  %v2673_v24 = vld [vmem:[#allocation5 + $0xdc] ss:$12 sps:$4 sm:$0xff]   ;;  %v2675_v27 = vld [vmem:[#allocation5 + $0xd8] ss:$12 sps:$4 sm:$0xff]   ;;  %v2676_v28 = vld [vmem:[#allocation5 + $0xf4] ss:$12 sps:$4 sm:$0xff]  }
  0x96   : > { %1360 = vmatpush1.bf16.msra.mxu0 %v2654_v5  ;;  %2393 = vmatprep.subr.bf16.mxu1 %v2705_v21  ;;  %v2715_v29 = vld [vmem:[#allocation5 + $0x110] ss:$12 sps:$4 sm:$0xff]   ;;  %v2720_v32 = vld [vmem:[#allocation5 + $0x128] ss:$12 sps:$4 sm:$0xff]   ;;  %v2679_v33 = vld [vmem:[#allocation5 + $0x10c] ss:$12 sps:$4 sm:$0xff]  }
  0x97   : > { %1361 = vmatprep.subr.bf16.mxu0 %v2655_v6  ;;  %v2716_v30 = vld [vmem:[#allocation5 + $0x50] ss:$12 sps:$4 sm:$0xff]   ;;  %v2721_v34 = vld [vmem:[#allocation5 + $0x68] ss:$12 sps:$4 sm:$0xff]   ;;  %v2725_v35 = vld [vmem:[#allocation5 + $0x140] ss:$12 sps:$4 sm:$0xff]  }
  0x98   : > { %v2678_v31 = vld [vmem:[#allocation5 + $0xf0] ss:$12 sps:$4 sm:$0xff]   ;;  %v2681_v36 = vld [vmem:[#allocation5 + $0x108] ss:$12 sps:$4 sm:$0xff]   ;;  %v2726_v38 = vld [vmem:[#allocation5 + $0x80] ss:$12 sps:$4 sm:$0xff]  }
  0x99   : > { %2394 = vmatpush3.bf16.msra.mxu1 %v2706_v22  ;;  %v2682_v37 = vld [vmem:[#allocation5 + $0x124] ss:$12 sps:$4 sm:$0xff]   ;;  %v2684_v40 = vld [vmem:[#allocation5 + $0x120] ss:$12 sps:$4 sm:$0xff]   ;;  %v2685_v41 = vld [vmem:[#allocation5 + $0x13c] ss:$12 sps:$4 sm:$0xff]  }
  0x9a   : > { %1362 = vmatpush1.bf16.msra.mxu0 %v2657_v7  ;;  %2395 = vmatprep.subr.bf16.mxu1 %v2710_v25  ;;  %v2730_v39 = vld [vmem:[#allocation5 + $0x158] ss:$12 sps:$4 sm:$0xff]   ;;  %v2735_v43 = vld [vmem:[#allocation5 + $0x170] ss:$12 sps:$4 sm:$0xff]   ;;  %v2688_v45 = vld [vmem:[#allocation5 + $0x154] ss:$12 sps:$4 sm:$0xff]  }
  0x9b   : > { %1363 = vmatprep.subr.bf16.mxu0 %v2658_v8  ;;  %v2731_v42 = vld [vmem:[#allocation5 + $0x98] ss:$12 sps:$4 sm:$0xff]   ;;  %v2736_v46 = vld [vmem:[#allocation5 + $0xb0] ss:$12 sps:$4 sm:$0xff]   ;;  %v2740_v47 = vld [vmem:[#allocation5 + $0x248] ss:$12 sps:$4 sm:$0xff]  }
  0x9c   : > { %v2687_v44 = vld [vmem:[#allocation5 + $0x138] ss:$12 sps:$4 sm:$0xff]   ;;  %v2690_v48 = vld [vmem:[#allocation5 + $0x150] ss:$12 sps:$4 sm:$0xff]   ;;  %v2741_v51 = vld [vmem:[#allocation5 + $0x188] ss:$12 sps:$4 sm:$0xff]  }
  0x9d   : > { %2396 = vmatpush3.bf16.msra.mxu1 %v2711_v26  ;;  %v340_v49 = vld [vmem:[%s3307_s8] sm:$0xff]  ;;  %v2750_v57 = vld [vmem:[#allocation5 + $0x278] ss:$12 sps:$4 sm:$0xff]   ;;  %s2388_s29 = sshll.u32 %s3137_s28, 6  ;;  %s338_s16 = scalar_lea.vmem [#allocation10], %s2203_s11 }
  0x9e   : > { %1364 = vmatpush1.bf16.msra.mxu0 %v2660_v9  ;;  %2397 = vmatprep.subr.bf16.mxu1 %v2715_v29  ;;  %v2691_v50 = vld [vmem:[#allocation5 + $0x16c] ss:$12 sps:$4 sm:$0xff]   ;;  %v347_v52 = vpack.c.bf16 %v340_v49, %v340_v49  ;;  %v2693_v54 = vld [vmem:[#allocation5 + $0x168] ss:$12 sps:$4 sm:$0xff]   ;;  %v2696_v55 = vld [vmem:[#allocation5 + $0x184] ss:$12 sps:$4 sm:$0xff]   ;;  %s3379_s15 = scalar_lea.hbm %s3430_s7, %s2388_s29 }
  0x9f   : > { %1365 = vmatprep.subr.bf16.mxu0 %v2661_v10  ;;  %v2745_v53 = vld [vmem:[#allocation5 + $0x260] ss:$12 sps:$4 sm:$0xff]   ;;  %v2699_v59 = vld [vmem:[#allocation5 + $0x19c] ss:$12 sps:$4 sm:$0xff]   ;;  %v2751_v60 = vld [vmem:[#allocation5 + $0x1b8] ss:$12 sps:$4 sm:$0xff]  }
  0xa0   : > { %v2746_v56 = vld [vmem:[#allocation5 + $0x1a0] ss:$12 sps:$4 sm:$0xff]   ;;  %v2755_v61 = vld [vmem:[#allocation5 + $0x290] ss:$12 sps:$4 sm:$0xff]   ;;  %v2697_v62 = vld [vmem:[#allocation5 + $0x198] ss:$12 sps:$4 sm:$0xff]  }
  0xa1   : > { %2398 = vmatpush3.bf16.msra.mxu1 %v2716_v30  ;;  %v2694_v58 = vld [vmem:[#allocation5 + $0x180] ss:$12 sps:$4 sm:$0xff]   ;;  %v2756_v0 = vld [vmem:[#allocation5 + $0x1d0] ss:$12 sps:$4 sm:$0xff]   ;;  %v2760_v1 = vld [vmem:[#allocation5 + $0x2a8] ss:$12 sps:$4 sm:$0xff]  }
  0xa2   : > { %1366 = vmatpush1.bf16.msra.mxu0 %v2663_v11  ;;  %2399 = vmatprep.subr.bf16.mxu1 %v2720_v32  ;;  %v2704_v63 = vld [vmem:[#allocation5 + $0x1b4] ss:$12 sps:$4 sm:$0xff]   ;;  %v2702_v2 = vld [vmem:[#allocation5 + $0x1b0] ss:$12 sps:$4 sm:$0xff]   ;;  %v2709_v3 = vld [vmem:[#allocation5 + $0x1cc] ss:$12 sps:$4 sm:$0xff]  }
  0xa3   : > { %1367 = vmatprep.subr.bf16.mxu0 %v2664_v12  ;;  %v2761_v4 = vld [vmem:[#allocation5 + $0x1e8] ss:$12 sps:$4 sm:$0xff]   ;;  %v2765_v5 = vld [vmem:[#allocation5 + $0x2c0] ss:$12 sps:$4 sm:$0xff]   ;;  %v2714_v9 = vld [vmem:[#allocation5 + $0x1e4] ss:$12 sps:$4 sm:$0xff]  }
  0xa4   : > { %v343_v6 = vld [vmem:[%s3307_s8 + $0x18] sm:$0xff]  ;;  %v2776_v18 = vld [vmem:[#allocation5 + $0x230] ss:$12 sps:$4 sm:$0xff]   ;;  %s2093_s21 = sshll.u32 %s338_s16, 4  ;;  %s2080_s1 = scalar_lea.sflag [#allocation4], %s3303_s13  ;;  %s3381_s21 = int_to_ptr.vmem [resolvable:$true] %s2093_s21 }
  0xa5   : > { %2400 = vmatpush3.bf16.msra.mxu1 %v2721_v34  ;;  %v2707_v7 = vld [vmem:[#allocation5 + $0x1c8] ss:$12 sps:$4 sm:$0xff]   ;;  %v350_v8 = vpack.c.bf16 %v343_v6, %v343_v6  ;;  %v2766_v10 = vld [vmem:[#allocation5 + $0x200] ss:$12 sps:$4 sm:$0xff]   ;;  %v2770_v11 = vld [vmem:[#allocation5 + $0x2d8] ss:$12 sps:$4 sm:$0xff]  }
  0xa6   : > { %1368 = vmatpush1.bf16.msra.mxu0 %v2666_v15  ;;  %2401 = vmatprep.subr.bf16.mxu1 %v2725_v35  ;;  %v2712_v12 = vld [vmem:[#allocation5 + $0x1e0] ss:$12 sps:$4 sm:$0xff]   ;;  %v2719_v13 = vld [vmem:[#allocation5 + $0x1fc] ss:$12 sps:$4 sm:$0xff]   ;;  %v2771_v14 = vld [vmem:[#allocation5 + $0x218] ss:$12 sps:$4 sm:$0xff]  }
  0xa7   : > { %1369 = vmatprep.subr.bf16.mxu0 %v2667_v16  ;;  %v2775_v15 = vld [vmem:[#allocation5 + $0x2f0] ss:$12 sps:$4 sm:$0xff]   ;;  %v2717_v16 = vld [vmem:[#allocation5 + $0x1f8] ss:$12 sps:$4 sm:$0xff]   ;;  %v2724_v17 = vld [vmem:[#allocation5 + $0x214] ss:$12 sps:$4 sm:$0xff]  }
  0xa8   : > { %v2722_v21 = vld [vmem:[#allocation5 + $0x210] ss:$12 sps:$4 sm:$0xff]   ;;  %v2729_v22 = vld [vmem:[#allocation5 + $0x22c] ss:$12 sps:$4 sm:$0xff]   ;;  %v2727_v26 = vld [vmem:[#allocation5 + $0x228] ss:$12 sps:$4 sm:$0xff]  }
  0xa9   : > { %2402 = vmatpush3.bf16.msra.mxu1 %v2726_v38  ;;  %v2785_v25 = vld [vmem:[#allocation5 + $0x3e0] ss:$12 sps:$4 sm:$0xff]   ;;  %v2790_v29 = vld [vmem:[#allocation5 + $0x3f8] ss:$12 sps:$4 sm:$0xff]   ;;  %v2742_v38 = vld [vmem:[#allocation5 + $0x270] ss:$12 sps:$4 sm:$0xff]  }
  0xaa   : > { %1370 = vmatpush1.bf16.msra.mxu0 %v2669_v19  ;;  %2403 = vmatprep.subr.bf16.mxu1 %v2730_v39  ;;  %v2780_v19 = vld [vmem:[#allocation5 + $0x3c8] ss:$12 sps:$4 sm:$0xff]   ;;  %v2732_v30 = vld [vmem:[#allocation5 + $0x240] ss:$12 sps:$4 sm:$0xff]   ;;  %v2791_v32 = vld [vmem:[#allocation5 + $0x338] ss:$12 sps:$4 sm:$0xff]  }
  0xab   : > { %1371 = vmatprep.subr.bf16.mxu0 %v2670_v20  ;;  %v342_v20 = vld [vmem:[%s3307_s8 + $0x10] sm:$0xff]  ;;  %s2988_s28 = scalar_lea.vmem %s3381_s21, 64 }
  0xac   : > { %v2737_v34 = vld [vmem:[#allocation5 + $0x258] ss:$12 sps:$4 sm:$0xff]   ;;  %v2744_v35 = vld [vmem:[#allocation5 + $0x274] ss:$12 sps:$4 sm:$0xff]   ;;  %v2759_v49 = vld [vmem:[#allocation5 + $0x2bc] ss:$12 sps:$4 sm:$0xff]   ;;  %p2989_p10 = scmp.ne.s32.totalorder %s3381_s21, %s2988_s28 }
  0xad   : > { %2404 = vmatpush3.bf16.msra.mxu1 %v2731_v42  ;;  %v2749_v39 = vld [vmem:[#allocation5 + $0x28c] ss:$12 sps:$4 sm:$0xff]  }
  0xae   : > { %1372 = vmatpush1.bf16.msra.mxu0 %v2672_v23  ;;  %2405 = vmatprep.subr.bf16.mxu1 %v2735_v43  ;;  %v2781_v23 = vld [vmem:[#allocation5 + $0x308] ss:$12 sps:$4 sm:$0xff]   ;;  %v2789_v6 = vld [vmem:[#allocation5 + $0x34c] ss:$12 sps:$4 sm:$0xff]   ;;  %p2990_p3 = pnand %p2989_p10, %p3258_p5 }
  0xaf   : > { %1373 = vmatprep.subr.bf16.mxu0 %v2673_v24  ;;  %v3325_v24 = vpack.c.bf16 %v342_v20, %v342_v20  ;;  %v345_v42 = vld [vmem:[%s3307_s8 + $0x28] sm:$0xff] }
  0xb0   : > { %v2747_v43 = vld [vmem:[#allocation5 + $0x288] ss:$12 sps:$4 sm:$0xff]   ;;  %p2991_p11 = pneg %p2990_p3 }
  0xb1   : > { %2406 = vmatpush3.bf16.msra.mxu1 %v2736_v46  ;;  %v2806_v46 = vld [vmem:[#allocation5 + $0x380] ss:$12 sps:$4 sm:$0xff]  }
  0xb2   : > { %1374 = vmatpush1.bf16.msra.mxu0 %v2675_v27  ;;  %2413 = vmatprep.subr.bf16.mxu1 %v2740_v47  ;;  %v2734_v27 = vld [vmem:[#allocation5 + $0x244] ss:$12 sps:$4 sm:$0xff]   ;;  %v2822_v20 = vld [vmem:[#allocation5 + $0x3f4] ss:$12 sps:$4 sm:$0xff]  }
  0xb3   : > { %1375 = vmatprep.subr.bf16.mxu0 %v2676_v28  ;;  %v2786_v28 = vld [vmem:[#allocation5 + $0x320] ss:$12 sps:$4 sm:$0xff]   ;;  %v2810_v47 = vld [vmem:[#allocation5 + $0x458] ss:$12 sps:$4 sm:$0xff]  }
  0xb4   : > { %1552 = vmatmul.mubr.bf16.vlgmr.msra.gmra.mrb[0].mxu1 %v347_v52 }
  0xb5   : > { %2414 = vmatpush3.bf16.msra.mxu1 %v2741_v51  ;;  %1591 = vmatprep.mubr.bf16.mxu1 %v350_v8  ;;  %v2815_v51 = vld [vmem:[#allocation5 + $0x470] ss:$12 sps:$4 sm:$0xff]  }
  0xb6   : > { %1376 = vmatpush1.bf16.msra.mxu0 %v2678_v31  ;;  %2415 = vmatprep.subr.bf16.mxu1 %v2745_v53  ;;  %v2739_v31 = vld [vmem:[#allocation5 + $0x25c] ss:$12 sps:$4 sm:$0xff]   ;;  %v2764_v53 = vld [vmem:[#allocation5 + $0x2d4] ss:$12 sps:$4 sm:$0xff]  }
  0xb7   : > { %1377 = vmatprep.subr.bf16.mxu0 %v2679_v33  ;;  %v2795_v33 = vld [vmem:[#allocation5 + $0x410] ss:$12 sps:$4 sm:$0xff]  }
  0xb9   : > { %2416 = vmatpush3.bf16.msra.mxu1 %v2746_v56  ;;  %v2762_v56 = vld [vmem:[#allocation5 + $0x2d0] ss:$12 sps:$4 sm:$0xff]  }
  0xba   : > { %1378 = vmatpush1.bf16.msra.mxu0 %v2681_v36  ;;  %2417 = vmatprep.subr.bf16.mxu1 %v2750_v57  ;;  %v2796_v36 = vld [vmem:[#allocation5 + $0x350] ss:$12 sps:$4 sm:$0xff]   ;;  %v2769_v57 = vld [vmem:[#allocation5 + $0x2ec] ss:$12 sps:$4 sm:$0xff]  }
  0xbb   : > { %1379 = vmatprep.subr.bf16.mxu0 %v2682_v37  ;;  %v2800_v37 = vld [vmem:[#allocation5 + $0x428] ss:$12 sps:$4 sm:$0xff]  }
  0xbd   : > { %2418 = vmatpush3.bf16.msra.mxu1 %v2751_v60  ;;  %v2767_v60 = vld [vmem:[#allocation5 + $0x2e8] ss:$12 sps:$4 sm:$0xff]  }
  0xbe   : > { %1380 = vmatpush1.bf16.msra.mxu0 %v2684_v40  ;;  %2419 = vmatprep.subr.bf16.mxu1 %v2755_v61  ;;  %v2801_v40 = vld [vmem:[#allocation5 + $0x368] ss:$12 sps:$4 sm:$0xff]   ;;  %v3072_v61 = vmov 0.0  }
  0xbf   : > { %1381 = vmatprep.subr.bf16.mxu0 %v2685_v41  ;;  %v2805_v41 = vld [vmem:[#allocation5 + $0x440] ss:$12 sps:$4 sm:$0xff]  }
  0xc1   : > { %2420 = vmatpush3.bf16.msra.mxu1 %v2756_v0  ;;  %v2772_v0 = vld [vmem:[#allocation5 + $0x300] ss:$12 sps:$4 sm:$0xff]  }
  0xc2   : > { %1382 = vmatpush1.bf16.msra.mxu0 %v2687_v44  ;;  %2421 = vmatprep.subr.bf16.mxu1 %v2760_v1  ;;  %v352_v44 = vpack.c.bf16 %v345_v42, %v345_v42  ;;  %v2779_v1 = vld [vmem:[#allocation5 + $0x31c] ss:$12 sps:$4 sm:$0xff]   ;;  %v2849_v42 = vld [vmem:[#allocation7 + $0x18] sm:$0xff]  }
  0xc3   : > { %1383 = vmatprep.subr.bf16.mxu0 %v2688_v45  ;;  %v2754_v45 = vld [vmem:[#allocation5 + $0x2a4] ss:$12 sps:$4 sm:$0xff]  }
  0xc5   : > { %2422 = vmatpush3.bf16.msra.mxu1 %v2761_v4  ;;  %v2784_v4 = vld [vmem:[#allocation5 + $0x334] ss:$12 sps:$4 sm:$0xff]  }
  0xc6   : > { %1384 = vmatpush1.bf16.msra.mxu0 %v2690_v48  ;;  %2423 = vmatprep.subr.bf16.mxu1 %v2765_v5  ;;  %v2752_v48 = vld [vmem:[#allocation5 + $0x2a0] ss:$12 sps:$4 sm:$0xff]   ;;  %v2782_v5 = vld [vmem:[#allocation5 + $0x330] ss:$12 sps:$4 sm:$0xff]  }
  0xc7   : > { %1385 = vmatprep.subr.bf16.mxu0 %v2691_v50  ;;  %v2811_v50 = vld [vmem:[#allocation5 + $0x398] ss:$12 sps:$4 sm:$0xff]  }
  0xc9   : > { %2424 = vmatpush3.bf16.msra.mxu1 %v2766_v10  ;;  %v2799_v10 = vld [vmem:[#allocation5 + $0x37c] ss:$12 sps:$4 sm:$0xff]  }
  0xca   : > { %1386 = vmatpush1.bf16.msra.mxu0 %v2693_v54  ;;  %2425 = vmatprep.subr.bf16.mxu1 %v2770_v11  ;;  %v2816_v54 = vld [vmem:[#allocation5 + $0x3b0] ss:$12 sps:$4 sm:$0xff]   ;;  %v2797_v11 = vld [vmem:[#allocation5 + $0x378] ss:$12 sps:$4 sm:$0xff]  }
  0xcb   : > { %1396 = vmatprep.subr.bf16.mxu0 %v2696_v55  ;;  %v344_v55 = vld [vmem:[%s3307_s8 + $0x20] sm:$0xff] }
  0xcd   : > { %1388 = vmatmul.mubr.bf16.vlgmr.msra.gmra.mrb[0].mxu0 %v347_v52  ;;  %2426 = vmatpush3.bf16.msra.mxu1 %v2771_v14  ;;  %v2757_v52 = vld [vmem:[#allocation5 + $0x2b8] ss:$12 sps:$4 sm:$0xff]  }
  0xce   : > { %1397 = vmatpush1.bf16.msra.mxu0 %v2694_v58  ;;  %1428 = vmatprep.mubr.bf16.mxu0 %v350_v8  ;;  %v2823_v58 = vld [vmem:[#allocation5 + $0x488] ss:$12 sps:$4 sm:$0xff]   ;;  %v2794_v8 = vld [vmem:[#allocation5 + $0x364] ss:$12 sps:$4 sm:$0xff]   ;;  %v2809_v14 = vld [vmem:[#allocation5 + $0x3ac] ss:$12 sps:$4 sm:$0xff]  }
  0xcf   : > { %1398 = vmatprep.subr.bf16.mxu0 %v2699_v59  ;;  %2427 = vmatprep.subr.bf16.mxu1 %v2775_v15  ;;  %v3330_v59 = vpack.c.bf16 %v344_v55, %v344_v55  ;;  %v2807_v15 = vld [vmem:[#allocation5 + $0x3a8] ss:$12 sps:$4 sm:$0xff]  }
  0xd1   : > { %2428 = vmatpush3.bf16.msra.mxu1 %v2776_v18  ;;  %v2819_v18 = vld [vmem:[#allocation5 + $0x3dc] ss:$12 sps:$4 sm:$0xff]  }
  0xd2   : > { %1399 = vmatpush1.bf16.msra.mxu0 %v2697_v62  ;;  %2435 = vmatprep.subr.bf16.mxu1 %v2780_v19  ;;  %v2774_v62 = vld [vmem:[#allocation5 + $0x304] ss:$12 sps:$4 sm:$0xff]  }
  0xd3   : > { %1400 = vmatprep.subr.bf16.mxu0 %v2704_v63  ;;  %v346_v63 = vld [vmem:[%s3307_s8 + $0x30] sm:$0xff]  ;;  %s3075_s8 = smov [#allocation10]  }
  0xd4   : > { %1592 = vmatmul.mubr.bf16.vlgmr.msra.gmra.mrb[4].mxu1 %v3325_v24  ;;  %v2817_v19 = vld [vmem:[#allocation5 + $0x3d8] ss:$12 sps:$4 sm:$0xff]   ;;  %s2992_s30 = sshll.u32 %s3075_s8, 4  ;;  %s2993_s30 = int_to_ptr.vmem [resolvable:$false] %s2992_s30 }
  0xd5   : > { %2436 = vmatpush3.bf16.msra.mxu1 %v2781_v23  ;;  %1631 = vmatprep.mubr.bf16.mxu1 %v352_v44  ;;  %v2824_v23 = vld [vmem:[#allocation5 + $0x408] ss:$12 sps:$4 sm:$0xff]   ;;  %s2994_s9 = scalar_lea.vmem %s2993_s30, 128  ;;  %p2995_p12 = scmp.lt.s32.totalorder %s3381_s21, %s2993_s30 }
  0xd6   : > { %1401 = vmatpush1.bf16.msra.mxu0 %v2702_v2  ;;  %2437 = vmatprep.subr.bf16.mxu1 %v2785_v25  ;;  %v3337_v2 = vpack.c.bf16 %v346_v63, %v346_v63  ;;  %v2827_v25 = vld [vmem:[#allocation5 + $0x420] ss:$12 sps:$4 sm:$0xff]   ;;  %p2996_p2 = scmp.lt.s32.totalorder %s2994_s9, %s2988_s28 }
  0xd7   : > { %1402 = vmatprep.subr.bf16.mxu0 %v2709_v3  ;;  %v2777_v3 = vld [vmem:[#allocation5 + $0x318] ss:$12 sps:$4 sm:$0xff]  }
  0xd8   : > { %p2997_p1 = por %p2996_p2, %p2995_p12 }
  0xd9   : > { %2438 = vmatpush3.bf16.msra.mxu1 %v2786_v28  ;;  %v2835_v28 = vld [vmem:[#allocation5 + $0x454] ss:$12 sps:$4 sm:$0xff]  }
  0xda   : > { %1403 = vmatpush1.bf16.msra.mxu0 %v2707_v7  ;;  %2439 = vmatprep.subr.bf16.mxu1 %v2790_v29  ;;  %v2787_v7 = vld [vmem:[#allocation5 + $0x348] ss:$12 sps:$4 sm:$0xff]   ;;  %v2833_v29 = vld [vmem:[#allocation5 + $0x450] ss:$12 sps:$4 sm:$0xff]   ;;  %p2998_p4 = pnand %p2997_p1, %p2991_p11 }
  0xdb   : > { %1404 = vmatprep.subr.bf16.mxu0 %v2714_v9  ;;  %v2792_v9 = vld [vmem:[#allocation5 + $0x360] ss:$12 sps:$4 sm:$0xff]  }
  0xdd   : > { %2440 = vmatpush3.bf16.msra.mxu1 %v2791_v32  ;;  %v2841_v32 = vld [vmem:[#allocation5 + $0x484] ss:$12 sps:$4 sm:$0xff]  }
  0xde   : > { %1405 = vmatpush1.bf16.msra.mxu0 %v2712_v12  ;;  %2441 = vmatprep.subr.bf16.mxu1 %v2795_v33  ;;  %v2804_v12 = vld [vmem:[#allocation5 + $0x394] ss:$12 sps:$4 sm:$0xff]  }
  0xdf   : > { %1406 = vmatprep.subr.bf16.mxu0 %v2719_v13  ;;  %v2802_v13 = vld [vmem:[#allocation5 + $0x390] ss:$12 sps:$4 sm:$0xff]   ;;  %v2839_v33 = vld [vmem:[#allocation5 + $0x480] ss:$12 sps:$4 sm:$0xff]  }
  0xe1   : > { %2442 = vmatpush3.bf16.msra.mxu1 %v2796_v36  ;;  %v2843_v36 = vld [vmem:[#allocation7] sm:$0xff]  }
  0xe2   : > { %1407 = vmatpush1.bf16.msra.mxu0 %v2717_v16  ;;  %2443 = vmatprep.subr.bf16.mxu1 %v2800_v37  ;;  %v2814_v16 = vld [vmem:[#allocation5 + $0x3c4] ss:$12 sps:$4 sm:$0xff]  }
  0xe3   : > { %1408 = vmatprep.subr.bf16.mxu0 %v2724_v17  ;;  %v2812_v17 = vld [vmem:[#allocation5 + $0x3c0] ss:$12 sps:$4 sm:$0xff]  }
  0xe4   : > { %v2844_v37 = vld [vmem:[#allocation7 + $0x48] sm:$0xff]  }
  0xe5   : > { %2444 = vmatpush3.bf16.msra.mxu1 %v2801_v40  ;;  %v2847_v40 = vld [vmem:[#allocation7 + $0x10] sm:$0xff]  }
  0xe6   : > { %1409 = vmatpush1.bf16.msra.mxu0 %v2722_v21  ;;  %2445 = vmatprep.subr.bf16.mxu1 %v2805_v41  ;;  %v2820_v21 = vld [vmem:[#allocation5 + $0x3f0] ss:$12 sps:$4 sm:$0xff]  }
  0xe7   : > { %1410 = vmatprep.subr.bf16.mxu0 %v2729_v22  ;;  %v2826_v22 = vld [vmem:[#allocation5 + $0x40c] ss:$12 sps:$4 sm:$0xff]   ;;  %v2848_v41 = vld [vmem:[#allocation7 + $0x58] sm:$0xff]  }
  0xe9   : > { %2446 = vmatpush3.bf16.msra.mxu1 %v2806_v46  ;;  %v2853_v46 = vld [vmem:[#allocation7 + $0x28] sm:$0xff]  }
  0xea   : > { %1411 = vmatpush1.bf16.msra.mxu0 %v2727_v26  ;;  %2447 = vmatprep.subr.bf16.mxu1 %v2810_v47  ;;  %v2832_v26 = vld [vmem:[#allocation5 + $0x43c] ss:$12 sps:$4 sm:$0xff]  }
  0xeb   : > { %1412 = vmatprep.subr.bf16.mxu0 %v2734_v27  ;;  %v2830_v27 = vld [vmem:[#allocation5 + $0x438] ss:$12 sps:$4 sm:$0xff]  }
  0xed   : > { %2448 = vmatpush3.bf16.msra.mxu1 %v2811_v50 }
  0xee   : > { %1413 = vmatpush1.bf16.msra.mxu0 %v2732_v30  ;;  %2449 = vmatprep.subr.bf16.mxu1 %v2815_v51  ;;  %v2838_v30 = vld [vmem:[#allocation5 + $0x46c] ss:$12 sps:$4 sm:$0xff]  }
  0xef   : > { %1414 = vmatprep.subr.bf16.mxu0 %v2739_v31  ;;  %v2836_v31 = vld [vmem:[#allocation5 + $0x468] ss:$12 sps:$4 sm:$0xff]  }
  0xf1   : > { %2450 = vmatpush3.bf16.msra.mxu1 %v2816_v54  ;;  %v2855_v54 = vld [vmem:[#allocation7 + $0x30] sm:$0xff]  }
  0xf2   : > { %1415 = vmatpush1.bf16.msra.mxu0 %v2737_v34  ;;  %2499 = vmatprep.subr.bf16.mxu1 %v3072_v61  ;;  %v3074_v34 = vmov 0  }
  0xf3   : > { %1416 = vmatprep.subr.bf16.mxu0 %v2744_v35  ;;  %v2842_v35 = vld [vmem:[#allocation7 + $0x40] sm:$0xff]  }
  0xf4   : > { %1632 = vmatmul.mubr.bf16.vlgmr.msra.gmra.mrb[8].mxu1 %v3330_v59 }
  0xf5   : > { %2500 = vmatpush3.bf16.msra.mxu1 %v2823_v58  ;;  %2501 = vmatprep.mubr.msk.bf16.mxu1 %vm3073_vm1, %v3072_v61 }
  0xf6   : > { %1417 = vmatpush1.bf16.msra.mxu0 %v2742_v38  ;;  %2459 = vmatprep.subr.bf16.mxu1 %v2842_v35  ;;  %v2845_v38 = vld [vmem:[#allocation7 + $0x8] sm:$0xff]  }
  0xf7   : > { %1418 = vmatprep.subr.bf16.mxu0 %v2749_v39  ;;  %v2846_v39 = vld [vmem:[#allocation7 + $0x50] sm:$0xff]   ;;  %v2863_v35 = vld [vmem:[#allocation7 + $0xa8] sm:$0xff]  }
  0xfa   : > { %1419 = vmatpush1.bf16.msra.mxu0 %v2747_v43  ;;  %v2850_v43 = vld [vmem:[#allocation7 + $0x60] sm:$0xff]  }
  0xfb   : > { %1420 = vmatprep.subr.bf16.mxu0 %v2754_v45  ;;  %v2852_v45 = vld [vmem:[#allocation7 + $0x68] sm:$0xff]  }
  0xfc   : > { %2502 = vmatmul.mubr.msk.bf16.vlgmr.msra.gmra.mrb[12].mxu1 %vm1351_vm0, %v3337_v2 }
  0xfd   : > { %2460 = vmatpush3.bf16.msra.mxu1 %v2843_v36  ;;  %v2864_v36 = vld [vmem:[#allocation7 + $0xb0] sm:$0xff]  }
  0xfe   : > { %1421 = vmatpush1.bf16.msra.mxu0 %v2752_v48  ;;  %2461 = vmatprep.subr.bf16.mxu1 %v2844_v37  ;;  %v2865_v37 = vld [vmem:[#allocation7 + $0xb8] sm:$0xff]  }
  0xff   : > { %1422 = vmatprep.subr.bf16.mxu0 %v2759_v49 }
 0x101   : > { %2462 = vmatpush3.bf16.msra.mxu1 %v2845_v38 }
 0x102   : > { %1423 = vmatpush1.bf16.msra.mxu0 %v2757_v52  ;;  %2463 = vmatprep.subr.bf16.mxu1 %v2846_v39  ;;  %v552_v52 = vlaneseq }
 0x103   : > { %1424 = vmatprep.subr.bf16.mxu0 %v2764_v53  ;;  %v2854_v53 = vld [vmem:[#allocation7 + $0x70] sm:$0xff]  }
 0x104   : > { %v553_v55 = vshrl.u32 %v552_v52, 7 }
 0x105   : > { %2464 = vmatpush3.bf16.msra.mxu1 %v2847_v40  ;;  %v2866_v40 = vld [vmem:[#allocation8] sm:$0xff]  }
 0x106   : > { %1425 = vmatpush1.bf16.msra.mxu0 %v2762_v56  ;;  %2465 = vmatprep.subr.bf16.mxu1 %v2848_v41  ;;  %v2856_v56 = vld [vmem:[#allocation7 + $0x78] sm:$0xff]   ;;  %v562_v58 = vsub.s32 2, %v553_v55  ;;  %v2867_v41 = vld [vmem:[#allocation8 + $0x8] sm:$0xff]  }
 0x107   : > { %1426 = vmatprep.subr.bf16.mxu0 %v2769_v57  ;;  %v2857_v57 = vld [vmem:[#allocation7 + $0x38] sm:$0xff]  }
 0x109   : > { %2466 = vmatpush3.bf16.msra.mxu1 %v2849_v42  ;;  %v2868_v42 = vld [vmem:[#allocation8 + $0x10] sm:$0xff]  }
 0x10a   : > { %1427 = vmatpush1.bf16.msra.mxu0 %v2767_v60  ;;  %2467 = vmatprep.subr.bf16.mxu1 %v2850_v43  ;;  %v2869_v43 = vld [vmem:[#allocation8 + $0x18] sm:$0xff]  }
 0x10b   : > { %1437 = vmatprep.subr.bf16.mxu0 %v2774_v62 }
 0x10d   : > { %1429 = vmatmul.mubr.bf16.vlgmr.msra.gmra.mrb[0].mxu0 %v3325_v24  ;;  %v2829_v24 = vld [vmem:[#allocation5 + $0x424] ss:$12 sps:$4 sm:$0xff]  }
 0x10e   : > { %1438 = vmatpush1.bf16.msra.mxu0 %v2772_v0  ;;  %1469 = vmatprep.mubr.bf16.mxu0 %v352_v44  ;;  %v2851_v44 = vld [vmem:[#allocation7 + $0x20] sm:$0xff]  }
 0x10f   : > { %1439 = vmatprep.subr.bf16.mxu0 %v2779_v1  ;;  %2468 = vmatpush3.bf16.msra.mxu1 %v2851_v44  ;;  %v2870_v44 = vld [vmem:[#allocation8 + $0x20] sm:$0xff]  }
 0x110   : > { %2469 = vmatprep.subr.bf16.mxu1 %v2852_v45  ;;  %v2871_v45 = vld [vmem:[#allocation8 + $0x28] sm:$0xff]  }
 0x112   : > { %1440 = vmatpush1.bf16.msra.mxu0 %v2777_v3 }
 0x113   : > { %1441 = vmatprep.subr.bf16.mxu0 %v2784_v4  ;;  %2470 = vmatpush3.bf16.msra.mxu1 %v2853_v46  ;;  %v2872_v46 = vld [vmem:[#allocation8 + $0x30] sm:$0xff]  }
 0x114   : > { %2471 = vmatprep.subr.bf16.mxu1 %v2854_v53  ;;  %v2353_v53 = vld [vmem:[%s3427_s4] ss:$0 sm:$0xff] }
 0x116   : > { %1442 = vmatpush1.bf16.msra.mxu0 %v2782_v5 }
 0x117   : > { %1443 = vmatprep.subr.bf16.mxu0 %v2789_v6  ;;  %2472 = vmatpush3.bf16.msra.mxu1 %v2855_v54 }
 0x118   : > { %2473 = vmatprep.subr.bf16.mxu1 %v2856_v56 }
 0x11a   : > { %1444 = vmatpush1.bf16.msra.mxu0 %v2787_v7 }
 0x11b   : > { %1445 = vmatprep.subr.bf16.mxu0 %v2794_v8  ;;  %2474 = vmatpush3.bf16.msra.mxu1 %v2857_v57 }
 0x11c   : > { %2505 = vmatprep.subr.bf16.mxu1 %v3072_v61 }
 0x11e   : > { %1446 = vmatpush1.bf16.msra.mxu0 %v2792_v9 }
 0x11f   : > { %1447 = vmatprep.subr.bf16.mxu0 %v2799_v10 }
 0x122   : > { %1448 = vmatpush1.bf16.msra.mxu0 %v2797_v11 }
 0x123   : > { %1449 = vmatprep.subr.bf16.mxu0 %v2804_v12 }
 0x126   : > { %1450 = vmatpush1.bf16.msra.mxu0 %v2802_v13 }
 0x127   : > { %1451 = vmatprep.subr.bf16.mxu0 %v2809_v14 }
 0x12a   : > { %1452 = vmatpush1.bf16.msra.mxu0 %v2807_v15 }
 0x12b   : > { %1453 = vmatprep.subr.bf16.mxu0 %v2814_v16  ;;  %v554_v16 = vsub.s32 0, %v553_v55 }
 0x12e   : > { %1454 = vmatpush1.bf16.msra.mxu0 %v2812_v17  ;;  %v558_v17 = vsub.s32 1, %v553_v55 }
 0x12f   : > { %1455 = vmatprep.subr.bf16.mxu0 %v2819_v18 }
 0x132   : > { %1456 = vmatpush1.bf16.msra.mxu0 %v2817_v19 }
 0x133   : > { %1457 = vmatprep.subr.bf16.mxu0 %v2822_v20 }
 0x136   : > { %1458 = vmatpush1.bf16.msra.mxu0 %v2820_v21 }
 0x137   : > { %1459 = vmatprep.subr.bf16.mxu0 %v2826_v22 }
 0x13a   : > { %1460 = vmatpush1.bf16.msra.mxu0 %v2824_v23 }
 0x13b   : > { %1461 = vmatprep.subr.bf16.mxu0 %v2829_v24 }
 0x13e   : > { %1462 = vmatpush1.bf16.msra.mxu0 %v2827_v25 }
 0x13f   : > { %1463 = vmatprep.subr.bf16.mxu0 %v2832_v26 }
 0x142   : > { %1464 = vmatpush1.bf16.msra.mxu0 %v2830_v27 }
 0x143   : > { %1465 = vmatprep.subr.bf16.mxu0 %v2835_v28 }
 0x146   : > { %1466 = vmatpush1.bf16.msra.mxu0 %v2833_v29  ;;  %v2858_v29 = vld [vmem:[#allocation7 + $0x80] sm:$0xff]  }
 0x147   : > { %1467 = vmatprep.subr.bf16.mxu0 %v2838_v30 }
 0x14a   : > { %1468 = vmatpush1.bf16.msra.mxu0 %v2836_v31  ;;  %v2859_v31 = vld [vmem:[#allocation7 + $0x88] sm:$0xff]  }
 0x14b   : > { %1478 = vmatprep.subr.bf16.mxu0 %v2841_v32  ;;  %v2860_v32 = vld [vmem:[#allocation7 + $0x90] sm:$0xff]  }
 0x14d   : > { %1470 = vmatmul.mubr.bf16.vlgmr.msra.gmra.mrb[0].mxu0 %v3330_v59  ;;  %v550_v59 = vld [vmem:[%s3425_s2] sm:$0x7] }
 0x14e   : > { %1479 = vmatpush1.bf16.msra.mxu0 %v2839_v33  ;;  %1510 = vmatprep.mubr.bf16.mxu0 %v3074_v34  ;;  %v563_v60 = vrot.slane %v550_v59, %v562_v58  ;;  %v555_v18 = vrot.slane %v550_v59, %v554_v16  ;;  %v559_v19 = vrot.slane %v550_v59, %v558_v17  ;;  %v2861_v33 = vld [vmem:[#allocation7 + $0x98] sm:$0xff]   ;;  %v2862_v34 = vld [vmem:[#allocation7 + $0xa0] sm:$0xff]  }
 0x159   : > { %2351 = vmatmul.mubr.msk.bf16.vlgmr.msra.gmra.mrb[0].mxu0 %vm1351_vm0, %v3337_v2 }
 0x187   : > { %v2407_v47 = vpop.f32.mrb[0].mxu1 }
 0x188   : > { %v2408_v48 = vpop.f32.mrb[1].mxu1 }
 0x189   : > { %v2409_v49 = vadd.f32 %v2408_v48, %v2407_v47  ;;  %v2410_v50 = vpop.f32.mrb[2].mxu1  ;;  %v2873_v47 = vld [vmem:[#allocation8 + $0x38] sm:$0xff]  }
 0x18a   : > { %v2411_v51 = vpop.f32.mrb[3].mxu1 }
 0x18b   : > { %v1554_v62 = vadd.f32 %v2409_v49, %v563_v60 }
 0x1a7   : > { %v2429_v63 = vpop.f32.mrb[4].mxu1 }
 0x1a8   : > { %v2430_v0 = vpop.f32.mrb[5].mxu1 }
 0x1a9   : > { %v2431_v1 = vadd.f32 %v2430_v0, %v2429_v63  ;;  %v2432_v2 = vpop.f32.mrb[6].mxu1 }
 0x1aa   : > { %v2433_v3 = vpop.f32.mrb[7].mxu1 }
 0x1ab   : > { %v1594_v4 = vadd.f32 %v2431_v1, %v1554_v62  ;;  %v2378_v62 = vld [vmem:[%s3429_s6] ss:$0 sm:$0xff] }
 0x1c7   : > { %v2451_v5 = vpop.f32.mrb[8].mxu1 }
 0x1c8   : > { %v2452_v6 = vpop.f32.mrb[9].mxu1 }
 0x1c9   : > { %v2453_v7 = vadd.f32 %v2452_v6, %v2451_v5  ;;  %v2454_v8 = vpop.f32.mrb[10].mxu1 }
 0x1ca   : > { %v2455_v9 = vpop.f32.mrb[11].mxu1 }
 0x1cb   : > { %v1634_v10 = vadd.f32 %v2453_v7, %v1594_v4 }
 0x1cf   : > { %v1673_v11 = vpop.f32.mrb[12].mxu1 }
 0x1d0   : > { %v1674_v12 = vadd.f32 %v1673_v11, %v1634_v10  ;;  %v2503_v13 = vpop.f32.mrb[13].mxu1 }
 0x1d1   : > { %v1676_v14 = vpop.f32.mrb[14].mxu1 }
 0x1d2   : > { %v2504_v15 = vpop.f32.mrb[15].mxu1  ;;  %v1681_v38 = vmax.f32 %v1674_v12, 0.0 }
 0x1d4   : > { %v1684_v39 = vpack.c.bf16 %v1681_v38, %v1681_v38 }
 0x22c   : > { %v1512_v20 = vpop.f32.mrb[0].mxu0 }
 0x22d   : > { %v2545_v21 = vadd.f32 %v1512_v20, %v555_v18  ;;  %v1514_v22 = vpop.f32.mrb[1].mxu0 }
 0x22e   : > { %v2546_v23 = vadd.f32 %v1514_v22, %v559_v19  ;;  %v1516_v24 = vpop.f32.mrb[2].mxu0 }
 0x22f   : > { %v1679_v25 = vmax.f32 %v2545_v21, 0.0  ;;  %v1517_v26 = vpop.f32.mrb[3].mxu0 }
 0x230   : > { %v1680_v27 = vmax.f32 %v2546_v23, 0.0 }
 0x231   : > { %v1682_v30 = vpack.c.bf16 %v1679_v25, %v1679_v25 }
 0x232   : > { %v1683_v28 = vpack.c.bf16 %v1680_v27, %v1680_v27 }
 0x234   : > { %1916 = vmatprep.mubr.bf16.mxu1 %v1683_v28 }
 0x235   : > { %1917 = vmatmul.mubr.bf16.vlgmr.msra.gmra.mrb[16].mxu1 %v1682_v30 }
 0x236   : > { %2506 = vmatpush3.bf16.msra.mxu1 %v2858_v29  ;;  %2521 = vmatprep.mubr.msk.bf16.mxu1 %vm3073_vm1, %v3072_v61 }
 0x237   : > { %2507 = vmatprep.subr.bf16.mxu1 %v3072_v61 }
 0x23a   : > { %2508 = vmatpush3.bf16.msra.mxu1 %v2859_v31 }
 0x23b   : > { %2509 = vmatprep.subr.bf16.mxu1 %v3072_v61 }
 0x23e   : > { %2510 = vmatpush3.bf16.msra.mxu1 %v2860_v32 }
 0x23f   : > { %2511 = vmatprep.subr.bf16.mxu1 %v3072_v61 }
 0x242   : > { %2512 = vmatpush3.bf16.msra.mxu1 %v2861_v33 }
 0x243   : > { %2513 = vmatprep.subr.bf16.mxu1 %v3072_v61 }
 0x246   : > { %2514 = vmatpush3.bf16.msra.mxu1 %v2862_v34 }
 0x247   : > { %2515 = vmatprep.subr.bf16.mxu1 %v3072_v61 }
 0x24a   : > { %2516 = vmatpush3.bf16.msra.mxu1 %v2863_v35 }
 0x24b   : > { %2517 = vmatprep.subr.bf16.mxu1 %v3072_v61 }
 0x24e   : > { %2518 = vmatpush3.bf16.msra.mxu1 %v2864_v36 }
 0x24f   : > { %2519 = vmatprep.subr.bf16.mxu1 %v3072_v61 }
 0x252   : > { %2520 = vmatpush3.bf16.msra.mxu1 %v2865_v37 }
 0x253   : > { %2525 = vmatprep.subr.bf16.mxu1 %v3072_v61 }
 0x255   : > { %2522 = vmatmul.mubr.bf16.vlgmr.msra.gmra.mrb[20].mxu1 %v1684_v39 }
 0x256   : > { %2541 = vmatprep.mubr.msk.bf16.mxu1 %vm3073_vm1, %v3072_v61  ;;  %2526 = vmatpush3.bf16.msra.mxu1 %v2866_v40 }
 0x257   : > { %2527 = vmatprep.subr.bf16.mxu1 %v3072_v61 }
 0x25a   : > { %2528 = vmatpush3.bf16.msra.mxu1 %v2867_v41 }
 0x25b   : > { %2529 = vmatprep.subr.bf16.mxu1 %v3072_v61 }
 0x25e   : > { %2530 = vmatpush3.bf16.msra.mxu1 %v2868_v42 }
 0x25f   : > { %2531 = vmatprep.subr.bf16.mxu1 %v3072_v61 }
 0x262   : > { %2532 = vmatpush3.bf16.msra.mxu1 %v2869_v43 }
 0x263   : > { %2533 = vmatprep.subr.bf16.mxu1 %v3072_v61 }
 0x266   : > { %2534 = vmatpush3.bf16.msra.mxu1 %v2870_v44 }
 0x267   : > { %2535 = vmatprep.subr.bf16.mxu1 %v3072_v61 }
 0x26a   : > { %2536 = vmatpush3.bf16.msra.mxu1 %v2871_v45 }
 0x26b   : > { %2537 = vmatprep.subr.bf16.mxu1 %v3072_v61 }
 0x26e   : > { %2538 = vmatpush3.bf16.msra.mxu1 %v2872_v46 }
 0x26f   : > { %2539 = vmatprep.subr.bf16.mxu1 %v3072_v61 }
 0x272   : > { %2540 = vmatpush3.bf16.msra.mxu1 %v2873_v47 }
 0x308   : > { %v2475_v48 = vpop.f32.mrb[16].mxu1 }
 0x309   : > { %v2476_v49 = vpop.f32.mrb[17].mxu1 }
 0x30a   : > { %v2477_v50 = vadd.f32 %v2476_v49, %v2475_v48  ;;  %v2478_v51 = vpop.f32.mrb[18].mxu1 }
 0x30b   : > { %v2479_v52 = vpop.f32.mrb[19].mxu1 }
 0x30c   : > { %v1919_v54 = vadd.f32 %v2477_v50, %v2353_v53 }
 0x328   : > { %v1958_v55 = vpop.f32.mrb[20].mxu1 }
 0x329   : > { %v1959_v56 = vadd.f32 %v1958_v55, %v1919_v54  ;;  %v2523_v57 = vpop.f32.mrb[21].mxu1 }
 0x32a   : > { %v1961_v58 = vpop.f32.mrb[22].mxu1 }
 0x32b   : > { %v1964_v59 = vmax.f32 %v1959_v56, 0.0  ;;  %v2524_v61 = vpop.f32.mrb[23].mxu1 }
 0x32d   : > { %v1965_v60 = vpack.c.bf16 %v1964_v59, %v1964_v59 }
 0x32f   : > { %2542 = vmatmul.mubr.bf16.vlgmr.msra.gmra.mrb[24].mxu1 %v1965_v60 }
 0x402   : > { %v2071_v63 = vpop.f32.mrb[24].mxu1 }
 0x403   : > { %v2072_v0 = vadd.f32 %v2378_v62, %v2071_v63  ;;  %v2543_v1 = vpop.f32.mrb[25].mxu1 }
 0x404   : > { %v2074_v2 = vpop.f32.mrb[26].mxu1 }
 0x405   : > { %v2077_v3 = vpack.c.bf16 %v2072_v0, %v2072_v0  ;;  %v2544_v4 = vpop.f32.mrb[27].mxu1 }
 0x407   : > { %2078 = vst [vmem:[%s338_s16] sm:$0xf] %v2077_v3 }
 0x408   : > { %3001 = shalt.err (!%p2998_p4)
}
 0x409   : > { %s3002_s13 = scalar_lea.hbm %s3379_s15, 64  ;;  %s3006_s11 = scalar_lea.hbm %s3430_s7, 128 }
 0x40a   : > { %p3003_p0 = scmp.ne.s32.totalorder %s3379_s15, %s3002_s13  ;;  %p3007_p8 = scmp.lt.u32.totalorder %s3379_s15, %s3430_s7 }
 0x40b   : > { %p3008_p13 = scmp.lt.u32.totalorder %s3006_s11, %s3002_s13  ;;  %p3010_p10 = scmp.lt.u32.totalorder %s3002_s13, %s3379_s15 }
 0x40c   : > { %p3004_p9 = pnand %p3003_p0, %p3258_p5 }
 0x40d   : > { %p3009_p6 = por %p3008_p13, %p3007_p8 }
 0x40e   : > { %p3005_p7 = pneg %p3004_p9 }
 0x40f   : > { %p3011_p3 = por %p3010_p10, %p3009_p6 }
 0x411   : > { %p3012_p11 = pnand %p3011_p3, %p3005_p7 }
 0x413   : > { %3015 = shalt.err (!%p3012_p11)
}
 0x414   : > { %2576 = dma.vmem_to_hbm [thread:$0]  (%p3258_p5), %s3381_s21, 64, %s3379_s15, %s2080_s1  }
 0x415 PF: > { %s3452_s29 = sld [smem:[#allocation15_spill]]  ;;  %s2105_s16 = sand.u32 1, %s3050_s24  }
 0x416   : > { %p3454_p2 = scmp.ge.s32.totalorder %s3062_s27, 2  ;;  %s2106_s10 = scalar_lea.sflag [#allocation4], %s2105_s16 }
 0x41b   : > { %p3453_p12 = scmp.ne.s32.totalorder %s3452_s29, 0 }
 0x41d   : > { %p2593_p1 = pnand %p3454_p2, %p3453_p12 }
 0x41f   : > { %3045 = dma.done.wait (!%p2593_p1), %s2106_s10, 64  }
 0x420   : > { %3047 = vsyncadd (!%p2593_p1), %s2106_s10, 4294967232  ;;  %p22_p4 = scmp.ge.s32.totalorder %s3226_s18, 4   ;;  %s3455_s24 = smov %s3054_s25 }
 0x421   : > { %s3456_s25 = smov %s3058_s26  ;;  %s3457_s26 = smov %s3254_s12 }
 0x422   : > { %s3458_s27 = smov %s3226_s18  ;;  %24 = sbr.rel (!%p22_p4) target bundleno = 9 (0x9), region = 105 }
 0x429   :  { %2111 = vsyncpa [#allocation3], 1 }
 0x42a   :  { %2113 = vsyncpa [#allocation3 + $0x1], 1 }
 0x42b   :  { %2114 = vsyncpa [#allocation6], 1 }
 0x42c   :  { %2115 = vsyncpa [#allocation9], 1 }
 0x42d   :  { %2116 = vsyncpa [#allocation4], 1 }
 0x42e   :  { %2118 = vsyncpa [#allocation4 + $0x1], 1 }

</bundles_post_ra>
